<compile_context>
chip_gen: v7x
topology: tpu7x:2x2x1
jax: 0.10.0
libtpu: 0.0.40
codegen_flags: <defaults>
</compile_context>

<pallas_src>
import functools

import jax
import jax.numpy as jnp
from jax.experimental import pallas as pl
from jax.experimental.pallas import tpu as pltpu

IN_FEATURES = 4      # input features
HIDDEN = 16          # hidden width
NUM_CLASSES = 3      # real logits
OUT_PAD = 8          # stored output lanes (3 logits + 5 zero lanes; 32 B/row writeback)
L1_ROWS = 8          # rows 0..3 = W1, row 4 = b1, rows 5..7 = 0
L2_ROWS = 24         # rows 0..15 = W2 (cols 0..2), row 16 = b2 (cols 0..2), rest 0


def iris_mlp_kernel(x_ref, l1_ref, l2_ref, out_ref):
    # x_ref  : (tb, 4)  f32  batch tile of raw features
    # l1_ref : (8, 16)  f32  rows 0..3 = W1, row 4 = b1                (resident)
    # l2_ref : (24, 8)  f32  rows 0..15 = W2 (cols 0..2), row 16 = b2  (resident)
    # out_ref: (tb, 8)  f32  cols 0..2 = logits, cols 3..7 = 0
    x = x_ref[...]
    w1 = l1_ref[0:4, :]           # (4, 16)  static sublane views of resident slabs
    b1 = l1_ref[4:5, :]           # (1, 16)
    w2 = l2_ref[0:16, :]          # (16, 8)
    b2 = l2_ref[16:17, :]         # (1, 8)

    # Layer 1: MXU matmul + broadcast VPU bias add + ReLU.
    h = jnp.dot(x, w1,
                preferred_element_type=jnp.float32,
                precision=jax.lax.Precision.HIGHEST) + b1      # (tb, 16)
    h = jnp.maximum(h, 0.0)

    # Layer 2: MXU matmul + broadcast VPU bias add.
    y = jnp.dot(h, w2,
                preferred_element_type=jnp.float32,
                precision=jax.lax.Precision.HIGHEST) + b2      # (tb, 8)
    out_ref[...] = y


def pack_params(w1, b1, w2, b2):
    """Pack params into two small f32 slabs. Call ONCE and reuse across forward calls.

    w1: (4, 16), b1: (16,), w2: (16, 3), b2: (3,) in [in_features, out_features]
    layout (PyTorch stores Linear weights as [out, in]; transpose before calling).
    """
    l1 = jnp.zeros((L1_ROWS, HIDDEN), jnp.float32)
    l1 = l1.at[0:IN_FEATURES, :].set(w1.astype(jnp.float32))
    l1 = l1.at[IN_FEATURES, :].set(b1.astype(jnp.float32))

    l2 = jnp.zeros((L2_ROWS, OUT_PAD), jnp.float32)
    l2 = l2.at[0:HIDDEN, 0:NUM_CLASSES].set(w2.astype(jnp.float32))
    l2 = l2.at[HIDDEN, 0:NUM_CLASSES].set(b2.astype(jnp.float32))
    return l1, l2


@functools.partial(jax.jit, static_argnames=("tb",))
def iris_net_forward(x, l1_slab, l2_slab, *, tb=512):
    """x: (B, 4) f32 -> (B, 3) logits.

    tb = batch tile (multiple of 8). Sweep 512-2048 for production-size batches; for
    tiny batches pick tb so grid_b >= 2 (both v7x TensorCores used). Ragged final
    tiles are handled by Pallas block masking (no wrapper padding pass over x).
    """
    assert tb % 8 == 0, "tb must be a multiple of 8 (sublane alignment)"
    B = x.shape[0]
    grid_b = pl.cdiv(B, tb)

    y = pl.pallas_call(
        iris_mlp_kernel,
        out_shape=jax.ShapeDtypeStruct((B, OUT_PAD), jnp.float32),
        grid_spec=pltpu.PrefetchScalarGridSpec(
            num_scalar_prefetch=0,
            grid=(grid_b,),
            in_specs=[
                # Raw features: last block dim 4 == full array dim -> legal, no x_aug copy.
                pl.BlockSpec((tb, IN_FEATURES), lambda i: (i, 0)),
                # Weight slabs: constant index_map -> fetched once, stay resident in VMEM.
                pl.BlockSpec((L1_ROWS, HIDDEN), lambda i: (0, 0)),
                pl.BlockSpec((L2_ROWS, OUT_PAD), lambda i: (0, 0)),
            ],
            out_specs=pl.BlockSpec((tb, OUT_PAD), lambda i: (i, 0)),
        ),
        compiler_params=pltpu.CompilerParams(
            # Independent batch tiles: grid steps shard across both TCs on v7x.
            dimension_semantics=("parallel",),
        ),
    )(x.astype(jnp.float32), l1_slab, l2_slab)

    return y[:, :NUM_CLASSES]   # only 32 B/row read -> negligible post-slice


def init_params(key):
    """Deterministic init mirroring nn.Linear's U(-1/sqrt(fan_in), +1/sqrt(fan_in))."""
    k1, k2, k3, k4 = jax.random.split(key, 4)
    lim1 = 1.0 / jnp.sqrt(4.0)
    lim2 = 1.0 / jnp.sqrt(16.0)
    # Stored as [in_features, out_features] (transposed vs. PyTorch's [out, in]).
    w1 = jax.random.uniform(k1, (IN_FEATURES, HIDDEN), jnp.float32, -lim1, lim1)
    b1 = jax.random.uniform(k2, (HIDDEN,), jnp.float32, -lim1, lim1)
    w2 = jax.random.uniform(k3, (HIDDEN, NUM_CLASSES), jnp.float32, -lim2, lim2)
    b2 = jax.random.uniform(k4, (NUM_CLASSES,), jnp.float32, -lim2, lim2)
    return w1, b1, w2, b2


def reference_forward(x, w1, b1, w2, b2):
    h = jnp.maximum(
        jnp.dot(x, w1, precision=jax.lax.Precision.HIGHEST) + b1, 0.0)
    return jnp.dot(h, w2, precision=jax.lax.Precision.HIGHEST) + b2


if __name__ == "__main__":
    key = jax.random.PRNGKey(0)
    kx, kp = jax.random.split(key)

    B = 150  # Iris-dataset-sized batch
    x = jax.random.normal(kx, (B, IN_FEATURES), dtype=jnp.float32)
    w1, b1, w2, b2 = init_params(kp)

    # Pack once (outside the per-call path), reuse for every forward call.
    l1_slab, l2_slab = pack_params(w1, b1, w2, b2)

    # tb=96 -> 2 grid steps for B=150 (exercises ragged-tile masking, keeps both v7x
    # TensorCores busy); use tb=512..2048 for production-size batches.
    out = iris_net_forward(x, l1_slab, l2_slab, tb=96)
    out = jax.block_until_ready(out)

    ref = reference_forward(x, w1, b1, w2, b2)
    assert out.shape == (B, NUM_CLASSES), out.shape
    assert jnp.allclose(out, ref, atol=1e-4, rtol=1e-4), "mismatch vs. JAX reference"

    print("KERNEL_OK")
</pallas_src>

<mosaic_0001>
module attributes {stable_mosaic.version = 11 : i64} {
  func.func @iris_mlp_kernel(%arg0: i32, %arg1: memref<96x4xf32, #tpu.memory_space<vmem>>, %arg2: memref<8x16xf32, #tpu.memory_space<vmem>>, %arg3: memref<24x8xf32, #tpu.memory_space<vmem>>, %arg4: memref<96x8xf32, #tpu.memory_space<vmem>>) attributes {dimension_semantics = [#tpu.dimension_semantics<parallel>], iteration_bounds = array<i64: 2>, scalar_prefetch = 0 : i64, scratch_operands = 0 : i64, tpu.core_type = #tpu.core_type<tc>, window_params = [{transform_indices = @transform_0, window_bounds = array<i64: 96, 4>}, {pipeline_mode = #tpu.pipeline_mode<synchronous>, transform_indices = @transform_1, window_bounds = array<i64: 8, 16>}, {pipeline_mode = #tpu.pipeline_mode<synchronous>, transform_indices = @transform_2, window_bounds = array<i64: 24, 8>}, {transform_indices = @transform_3, window_bounds = array<i64: 96, 8>}]} {
    %c0 = arith.constant 0 : index
    %c0_0 = arith.constant 0 : index
    %0 = vector.load %arg1[%c0, %c0_0] : memref<96x4xf32, #tpu.memory_space<vmem>>, vector<96x4xf32>
    %c0_1 = arith.constant 0 : index
    %c0_2 = arith.constant 0 : index
    %1 = vector.load %arg2[%c0_1, %c0_2] : memref<8x16xf32, #tpu.memory_space<vmem>>, vector<4x16xf32>
    %c4 = arith.constant 4 : index
    %c0_3 = arith.constant 0 : index
    %2 = vector.load %arg2[%c4, %c0_3] : memref<8x16xf32, #tpu.memory_space<vmem>>, vector<1x16xf32>
    %c0_4 = arith.constant 0 : index
    %c0_5 = arith.constant 0 : index
    %3 = vector.load %arg3[%c0_4, %c0_5] : memref<24x8xf32, #tpu.memory_space<vmem>>, vector<16x8xf32>
    %c16 = arith.constant 16 : index
    %c0_6 = arith.constant 0 : index
    %4 = vector.load %arg3[%c16, %c0_6] : memref<24x8xf32, #tpu.memory_space<vmem>>, vector<1x8xf32>
    %cst = arith.constant dense<0.000000e+00> : vector<96x16xf32>
    %5 = tpu.matmul %0, %1, %cst {dimension_numbers = #tpu.dot_dimension_numbers<[1], [0], [0], [1], [0, 0, 1, 1], [], []>, precision = #tpu.contract_precision<fp32>} : vector<96x4xf32>, vector<4x16xf32>, vector<96x16xf32> -> vector<96x16xf32>
    %6 = vector.broadcast %2 : vector<1x16xf32> to vector<96x16xf32>
    %7 = arith.addf %5, %6 : vector<96x16xf32>
    %cst_7 = arith.constant 0.000000e+00 : f32
    %8 = vector.broadcast %cst_7 : f32 to vector<96x16xf32>
    %9 = arith.maximumf %7, %8 : vector<96x16xf32>
    %cst_8 = arith.constant dense<0.000000e+00> : vector<96x8xf32>
    %10 = tpu.matmul %9, %3, %cst_8 {dimension_numbers = #tpu.dot_dimension_numbers<[1], [0], [0], [1], [0, 0, 1, 1], [], []>, precision = #tpu.contract_precision<fp32>} : vector<96x16xf32>, vector<16x8xf32>, vector<96x8xf32> -> vector<96x8xf32>
    %11 = vector.broadcast %4 : vector<1x8xf32> to vector<96x8xf32>
    %12 = arith.addf %10, %11 : vector<96x8xf32>
    %c0_9 = arith.constant 0 : index
    %c0_10 = arith.constant 0 : index
    %13 = vector.load %arg4[%c0_9, %c0_10] : memref<96x8xf32, #tpu.memory_space<vmem>>, vector<96x8xf32>
    tpu.vector_store %arg4[%c0_9, %c0_10], %12 {strides = array<i32>} : memref<96x8xf32, #tpu.memory_space<vmem>>, vector<96x8xf32>,
    return
  }
  func.func @transform_0(%arg0: i32) -> (i32, i32) {
    %c0_i32 = arith.constant 0 : i32
    %c0_i32_0 = arith.constant 0 : i32
    return %arg0, %c0_i32 : i32, i32
  }
  func.func @transform_1(%arg0: i32) -> (i32, i32) {
    %c0_i32 = arith.constant 0 : i32
    %c0_i32_0 = arith.constant 0 : i32
    %c0_i32_1 = arith.constant 0 : i32
    return %c0_i32, %c0_i32_0 : i32, i32
  }
  func.func @transform_2(%arg0: i32) -> (i32, i32) {
    %c0_i32 = arith.constant 0 : i32
    %c0_i32_0 = arith.constant 0 : i32
    %c0_i32_1 = arith.constant 0 : i32
    return %c0_i32, %c0_i32_0 : i32, i32
  }
  func.func @transform_3(%arg0: i32) -> (i32, i32) {
    %c0_i32 = arith.constant 0 : i32
    %c0_i32_0 = arith.constant 0 : i32
    return %arg0, %c0_i32 : i32, i32
  }
}

</mosaic_0001>

<bundles_post_ra>
// kernel: iris_net_forward.1
= control target key start
LH: loop header
LB: loop body
LE: loop exit
PB: predicated region body
PF: predicated region fallthrough
CT: control target
= control target key end

     0   :  { %s3236_s12 = smov 0   ;;  %s3238_s13 = smov 0   ;;  %s3784_s0 = inlined_call_operand.vmem [shape: f32[150,4], index: 0, kind: input, shape index: {}]   ;;  %s3785_s1 = inlined_call_operand.vmem [shape: f32[8,16], index: 1, kind: input, shape index: {}]   ;;  %s3786_s2 = inlined_call_operand.vmem [shape: f32[24,8], index: 2, kind: input, shape index: {}]   ;;  %s3787_s3 = inlined_call_operand.vmem [shape: f32[150,8], index: 3, kind: output, shape index: {}]  }
   0x1   :  { %s3240_s14 = smov 0  }
   0x2 LB: > { %s3249_s15 = sadd.s32 4294967295, %s3182_s14   ;;  %s3251_s16 = sadd.s32 1, %s3182_s14   ;;  %s3182_s14 = sphi %s3240_s14, %s3794_s14   ;;  %s3178_s13 = sphi %s3238_s13, %s3793_s13   ;;  %s3174_s12 = sphi %s3236_s12, %s3792_s12  }
   0x3   : > { %s85_s17 = ssub.s32 %s3182_s14, %s3251_s16  ;;  %s88_s18 = sadd.s32 1, %s3178_s13 }
   0x4   : > { %p86_p0 = scmp.eq.s32.totalorder %s85_s17, 0  ;;  %p98_p1 = scmp.ne.s32.totalorder %s3178_s13, %s3174_s12 }
   0x5   : > { %p99_p2 = scmp.eq.s32.totalorder %s3249_s15, 1  ;;  %p2435_p3 = scmp.ge.s32.totalorder %s3182_s14, 1 }
   0x6   : > { %s3259_s19 = scalar_select %p86_p0, %s3178_s13, %s88_s18  }
   0x7   : > { %p3261_p4 = por %p99_p2, %p98_p1  ;;  %p146_p5 = scmp.lt.s32.totalorder %s3182_s14, 3 }
   0x9   : > { %p147_p6 = pnand %p2435_p3, %p146_p5 }
   0xa   : > { %v204_v0 = vld [vmem:[%s3785_s1] sm:$0xf] (!%p147_p6)  ;;  %vm250_vm0 = vcmask (!%p147_p6), 1043456   ;;  %s3269_s23 = smul.u32 (!%p147_p6), 12, %s3249_s15  ;;  %vm213_vm1 = vcmask (!%p147_p6), 31744   ;;  %vm1189_vm2 = vcmask (!%p147_p6), 130048  }
   0xb   : > { %150 = sbr.rel (%p147_p6) target bundleno = 801 (0x321), region = 32  ;;  %v252_v1 = vsel (!%p147_p6), %vm250_vm0, %v204_v0, 0  ;;  %s170_s8 = sand.u32 (!%p147_p6), 1, %s3174_s12   ;;  %vm2158_vm3 = vcmask (!%p147_p6), 64512  }
   0xc   : > { %v3271_v2 = vand.u32 (!%p147_p6), 4294901760, %v252_v1  ;;  %p178_p7 = scmp.lt.s32.totalorder (!%p147_p6), %s3269_s23, 18  ;;  %s3034_s9 = smul.u32 (!%p147_p6), 96, %s170_s8 }
   0xe   : > { %2614 = vmatprep.subr.mxu0 (!%p147_p6), %v3271_v2  ;;  %v3277_v3 = vsub.f32 (!%p147_p6), %v252_v1, %v3271_v2  ;;  %s3699_s14 = scalar_lea.vmem (!%p147_p6), [#allocation2], %s3034_s9  }
   0xf   : > { %2615 = vmatpush3.msra.mxu0 (!%p147_p6), %v3271_v2 }
  0x10   : > { %v3281_v4 = vand.u32 (!%p147_p6), 4294901760, %v3277_v3 }
  0x12   : > { %s179_s24 = scalar_select %p178_p7, %s3269_s23, 18  ;;  %v444_v6 = vsub.f32 %v3277_v3, %v3281_v4 }
  0x13   : > { %s2179_s12 = ssub.s32 (%p3261_p4), 19, %s3269_s23  ;;  %s2451_s17 = smul.u32 (%p3261_p4), 96, %s3249_s15 }
  0x14   : > { %s2436_s25 = sshll.u32 %s179_s24, 3  ;;  %v445_v16 = vand.u32 4294901760, %v444_v6  ;;  %p2180_p8 = scmp.lt.s32.totalorder (%p3261_p4), %s2179_s12, 12 }
  0x15   : > { %s3286_s28 = scalar_lea.vmem %s3784_s0, %s2436_s25  ;;  %s3732_s22 = scalar_lea.vmem (%p3261_p4), %s3787_s3, %s2451_s17  }
  0x16   : > { %v192_v5 = vld [vmem:[%s3286_s28] sm:$0xff]  ;;  %v193_v7 = vld [vmem:[%s3286_s28 + $0x8] sm:$0xff]  ;;  %v194_v8 = vld [vmem:[%s3286_s28 + $0x10] sm:$0xff]  ;;  %2634 = vmatprep.subr.mxu0 %v445_v16 }
  0x17   : > { %v215_v9 = vsel %vm213_vm1, %v192_v5, 0  ;;  %v218_v10 = vsel %vm213_vm1, %v193_v7, 0  ;;  %v221_v11 = vsel %vm213_vm1, %v194_v8, 0  ;;  %v195_v12 = vld [vmem:[%s3286_s28 + $0x18] sm:$0xff]  ;;  %v196_v13 = vld [vmem:[%s3286_s28 + $0x20] sm:$0xff]  ;;  %v197_v14 = vld [vmem:[%s3286_s28 + $0x28] sm:$0xff] }
  0x18   : > { %v3299_v15 = vand.u32 4294901760, %v215_v9  ;;  %v3301_v17 = vand.u32 4294901760, %v218_v10  ;;  %v3303_v18 = vand.u32 4294901760, %v221_v11  ;;  %v198_v19 = vld [vmem:[%s3286_s28 + $0x30] sm:$0xff]  ;;  %v199_v20 = vld [vmem:[%s3286_s28 + $0x38] sm:$0xff]  ;;  %v224_v21 = vsel %vm213_vm1, %v195_v12, 0 }
  0x19   : > { %v227_v22 = vsel %vm213_vm1, %v196_v13, 0  ;;  %v230_v23 = vsel %vm213_vm1, %v197_v14, 0  ;;  %v233_v24 = vsel %vm213_vm1, %v198_v19, 0  ;;  %v3320_v28 = vand.u32 4294901760, %v224_v21  ;;  %v200_v49 = vld [vmem:[%s3286_s28 + $0x40] sm:$0xff]  ;;  %v201_v50 = vld [vmem:[%s3286_s28 + $0x48] sm:$0xff] }
  0x1a   : > { %v3312_v25 = vsub.f32 %v215_v9, %v3299_v15  ;;  %v3315_v26 = vsub.f32 %v218_v10, %v3301_v17  ;;  %v3318_v27 = vsub.f32 %v221_v11, %v3303_v18  ;;  %v3322_v29 = vand.u32 4294901760, %v227_v22  ;;  %v202_v51 = vld [vmem:[%s3286_s28 + $0x50] sm:$0xff]  ;;  %v203_v57 = vld [vmem:[%s3286_s28 + $0x58] sm:$0xff] }
  0x1b   : > { %v3324_v30 = vand.u32 4294901760, %v230_v23  ;;  %v3326_v31 = vand.u32 4294901760, %v233_v24  ;;  %v236_v32 = vsel %vm213_vm1, %v199_v20, 0  ;;  %v3333_v36 = vsub.f32 %v224_v21, %v3320_v28 }
  0x1c   : > { %v322_v33 = vand.u32 4294901760, %v3312_v25  ;;  %v332_v34 = vand.u32 4294901760, %v3315_v26  ;;  %v342_v35 = vand.u32 4294901760, %v3318_v27  ;;  %v3336_v37 = vsub.f32 %v227_v22, %v3322_v29 }
  0x1d   : > { %v3339_v38 = vsub.f32 %v230_v23, %v3324_v30  ;;  %v3342_v39 = vsub.f32 %v233_v24, %v3326_v31  ;;  %v3344_v40 = vand.u32 4294901760, %v236_v32  ;;  %v352_v44 = vand.u32 4294901760, %v3333_v36 }
  0x1e   : > { %v323_v41 = vsub.f32 %v3312_v25, %v322_v33  ;;  %v333_v42 = vsub.f32 %v3315_v26, %v332_v34  ;;  %v343_v43 = vsub.f32 %v3318_v27, %v342_v35  ;;  %v362_v45 = vand.u32 4294901760, %v3336_v37 }
  0x1f   : > { %v372_v46 = vand.u32 4294901760, %v3339_v38  ;;  %v382_v47 = vand.u32 4294901760, %v3342_v39  ;;  %v3360_v48 = vsub.f32 %v236_v32, %v3344_v40  ;;  %v353_v55 = vsub.f32 %v3333_v36, %v352_v44 }
  0x20   : > { %v324_v52 = vand.u32 4294901760, %v323_v41  ;;  %v334_v53 = vand.u32 4294901760, %v333_v42  ;;  %v344_v54 = vand.u32 4294901760, %v343_v43  ;;  %v363_v56 = vsub.f32 %v3336_v37, %v362_v45 }
  0x21   : > { %v373_v58 = vsub.f32 %v3339_v38, %v372_v46  ;;  %v239_v59 = vsel %vm213_vm1, %v200_v49, 0  ;;  %v242_v60 = vsel %vm213_vm1, %v201_v50, 0  ;;  %v245_v61 = vsel %vm213_vm1, %v202_v51, 0 }
  0x22   : > { %2616 = vmatprep.mubr.f32.mxu0 %v324_v52  ;;  %v354_v62 = vand.u32 4294901760, %v353_v55  ;;  %v364_v63 = vand.u32 4294901760, %v363_v56  ;;  %v383_v0 = vsub.f32 %v3342_v39, %v382_v47  ;;  %v392_v1 = vand.u32 4294901760, %v3360_v48 }
  0x23   : > { %2617 = vmatmul.mubr.f32.vlgmr.msra.gmra.mrb[0].mxu0 %v334_v53  ;;  %v3382_v5 = vand.u32 4294901760, %v239_v59  ;;  %v3384_v6 = vand.u32 4294901760, %v242_v60  ;;  %v3386_v7 = vand.u32 4294901760, %v245_v61  ;;  %v248_v8 = vsel %vm213_vm1, %v203_v57, 0 }
  0x24   : > { %2635 = vmatpush3.msra.mxu0 %v445_v16  ;;  %2619 = vmatprep.mubr.f32.mxu0 %v344_v54  ;;  %v3389_v9 = vand.u32 4294901760, %v248_v8  ;;  %v374_v13 = vand.u32 4294901760, %v373_v58  ;;  %v393_v14 = vsub.f32 %v3360_v48, %v392_v1  ;;  %v384_v19 = vand.u32 4294901760, %v383_v0 }
  0x25   : > { %2654 = vmatprep.subr.mxu0 %v3277_v3  ;;  %v3393_v10 = vsub.f32 %v239_v59, %v3382_v5  ;;  %v3396_v11 = vsub.f32 %v242_v60, %v3384_v6  ;;  %v3399_v12 = vsub.f32 %v245_v61, %v3386_v7 }
  0x26   : > { %v3405_v16 = vsub.f32 %v248_v8, %v3389_v9  ;;  %v394_v24 = vand.u32 4294901760, %v393_v14 }
  0x27   : > { %2620 = vmatmul.mubr.f32.gmra.mrb[2].mxu0 %v354_v62  ;;  %v402_v20 = vand.u32 4294901760, %v3393_v10  ;;  %v412_v21 = vand.u32 4294901760, %v3396_v11  ;;  %v422_v22 = vand.u32 4294901760, %v3399_v12 }
  0x28   : > { %2622 = vmatprep.mubr.f32.mxu0 %v364_v63  ;;  %v432_v41 = vand.u32 4294901760, %v3405_v16 }
  0x29   : > { %v403_v23 = vsub.f32 %v3393_v10, %v402_v20  ;;  %v413_v32 = vsub.f32 %v3396_v11, %v412_v21  ;;  %v423_v43 = vsub.f32 %v3399_v12, %v422_v22 }
  0x2a   : > { %v433_v50 = vsub.f32 %v3405_v16, %v432_v41 }
  0x2b   : > { %2623 = vmatmul.mubr.f32.gmra.mrb[4].mxu0 %v374_v13  ;;  %v404_v42 = vand.u32 4294901760, %v403_v23  ;;  %v414_v49 = vand.u32 4294901760, %v413_v32  ;;  %v424_v51 = vand.u32 4294901760, %v423_v43 }
  0x2c   : > { %2625 = vmatprep.mubr.f32.mxu0 %v384_v19  ;;  %v434_v52 = vand.u32 4294901760, %v433_v50 }
  0x2f   : > { %2626 = vmatmul.mubr.f32.gmra.mrb[6].mxu0 %v394_v24 }
  0x30   : > { %2628 = vmatprep.mubr.f32.mxu0 %v404_v42 }
  0x33   : > { %2629 = vmatmul.mubr.f32.gmra.mrb[8].mxu0 %v414_v49 }
  0x34   : > { %2631 = vmatprep.mubr.f32.mxu0 %v424_v51 }
  0x37   : > { %2632 = vmatmul.mubr.f32.gmra.mrb[10].mxu0 %v434_v52 }
  0x38   : > { %2636 = vmatprep.mubr.f32.mxu0 %v3299_v15 }
  0x3b   : > { %2637 = vmatmul.mubr.f32.vlgmr.msra.gmra.mrb[0].mxu0 %v3301_v17 }
  0x3c   : > { %2655 = vmatpush3.msra.mxu0 %v3277_v3  ;;  %2639 = vmatprep.mubr.f32.mxu0 %v3303_v18  ;;  %v207_v3 = vld [vmem:[%s3786_s2 + $0x8] sm:$0xff] }
  0x3d   : > { %2674 = vmatprep.subr.mxu0 %v3271_v2 }
  0x3f   : > { %2640 = vmatmul.mubr.f32.gmra.mrb[2].mxu0 %v3320_v28 }
  0x40   : > { %2642 = vmatprep.mubr.f32.mxu0 %v3322_v29 }
  0x43   : > { %2643 = vmatmul.mubr.f32.gmra.mrb[4].mxu0 %v3324_v30 }
  0x44   : > { %2645 = vmatprep.mubr.f32.mxu0 %v3326_v31 }
  0x47   : > { %2646 = vmatmul.mubr.f32.gmra.mrb[6].mxu0 %v3344_v40 }
  0x48   : > { %2648 = vmatprep.mubr.f32.mxu0 %v3382_v5 }
  0x4b   : > { %2649 = vmatmul.mubr.f32.gmra.mrb[8].mxu0 %v3384_v6 }
  0x4c   : > { %2651 = vmatprep.mubr.f32.mxu0 %v3386_v7 }
  0x4f   : > { %2652 = vmatmul.mubr.f32.gmra.mrb[10].mxu0 %v3389_v9 }
  0x50   : > { %2656 = vmatprep.mubr.f32.mxu0 %v3312_v25 }
  0x53   : > { %2657 = vmatmul.mubr.f32.vlgmr.msra.gmra.mrb[0].mxu0 %v3315_v26 }
  0x54   : > { %2675 = vmatpush3.msra.mxu0 %v3271_v2  ;;  %2659 = vmatprep.mubr.f32.mxu0 %v3318_v27 }
  0x55   : > { %2694 = vmatprep.subr.mxu0 %v3281_v4 }
  0x57   : > { %2660 = vmatmul.mubr.f32.gmra.mrb[2].mxu0 %v3333_v36  ;;  %v3506_v36 = vld [vmem:[%s3785_s1 + $0x4] ss:$0 sm:$0xff] }
  0x58   : > { %2662 = vmatprep.mubr.f32.mxu0 %v3336_v37 }
  0x5b   : > { %2663 = vmatmul.mubr.f32.gmra.mrb[4].mxu0 %v3339_v38 }
  0x5c   : > { %2665 = vmatprep.mubr.f32.mxu0 %v3342_v39 }
  0x5f   : > { %2666 = vmatmul.mubr.f32.gmra.mrb[6].mxu0 %v3360_v48 }
  0x60   : > { %2668 = vmatprep.mubr.f32.mxu0 %v3393_v10 }
  0x63   : > { %2669 = vmatmul.mubr.f32.gmra.mrb[8].mxu0 %v3396_v11 }
  0x64   : > { %2671 = vmatprep.mubr.f32.mxu0 %v3399_v12 }
  0x67   : > { %2672 = vmatmul.mubr.f32.gmra.mrb[10].mxu0 %v3405_v16 }
  0x68   : > { %2676 = vmatprep.mubr.f32.mxu0 %v322_v33 }
  0x6b   : > { %2677 = vmatmul.mubr.f32.vlgmr.msra.gmra.mrb[0].mxu0 %v332_v34 }
  0x6c   : > { %2695 = vmatpush3.msra.mxu0 %v3281_v4  ;;  %2679 = vmatprep.mubr.f32.mxu0 %v342_v35 }
  0x6d   : > { %2714 = vmatprep.subr.mxu0 %v3271_v2 }
  0x6f   : > { %2680 = vmatmul.mubr.f32.gmra.mrb[2].mxu0 %v352_v44 }
  0x70   : > { %2682 = vmatprep.mubr.f32.mxu0 %v362_v45 }
  0x73   : > { %2683 = vmatmul.mubr.f32.gmra.mrb[4].mxu0 %v372_v46 }
  0x74   : > { %2685 = vmatprep.mubr.f32.mxu0 %v382_v47 }
  0x77   : > { %2686 = vmatmul.mubr.f32.gmra.mrb[6].mxu0 %v392_v1 }
  0x78   : > { %2688 = vmatprep.mubr.f32.mxu0 %v402_v20 }
  0x7b   : > { %2689 = vmatmul.mubr.f32.gmra.mrb[8].mxu0 %v412_v21 }
  0x7c   : > { %2691 = vmatprep.mubr.f32.mxu0 %v422_v22 }
  0x7f   : > { %2692 = vmatmul.mubr.f32.gmra.mrb[10].mxu0 %v432_v41 }
  0x80   : > { %2696 = vmatprep.mubr.f32.mxu0 %v3299_v15 }
  0x83   : > { %2697 = vmatmul.mubr.f32.vlgmr.msra.gmra.mrb[0].mxu0 %v3301_v17 }
  0x84   : > { %2715 = vmatpush3.msra.mxu0 %v3271_v2  ;;  %2699 = vmatprep.mubr.f32.mxu0 %v3303_v18  ;;  %v206_v2 = vld [vmem:[%s3786_s2] sm:$0xff] }
  0x85   : > { %v1227_v4 = vand.u32 4294901760, %v206_v2 }
  0x87   : > { %2700 = vmatmul.mubr.f32.gmra.mrb[2].mxu0 %v3320_v28 }
  0x88   : > { %2702 = vmatprep.mubr.f32.mxu0 %v3322_v29 }
  0x8b   : > { %2703 = vmatmul.mubr.f32.gmra.mrb[4].mxu0 %v3324_v30 }
  0x8c   : > { %2705 = vmatprep.mubr.f32.mxu0 %v3326_v31 }
  0x8f   : > { %2706 = vmatmul.mubr.f32.gmra.mrb[6].mxu0 %v3344_v40 }
  0x90   : > { %2708 = vmatprep.mubr.f32.mxu0 %v3382_v5 }
  0x93   : > { %2709 = vmatmul.mubr.f32.gmra.mrb[8].mxu0 %v3384_v6 }
  0x94   : > { %2711 = vmatprep.mubr.f32.mxu0 %v3386_v7 }
  0x97   : > { %2712 = vmatmul.mubr.f32.gmra.mrb[10].mxu0 %v3389_v9 }
  0x98   : > { %2716 = vmatprep.mubr.f32.mxu0 %v3299_v15  ;;  %v1230_v15 = vand.u32 4294901760, %v207_v3 }
  0x9a   : > { %v1422_v25 = vsub.f32 %v207_v3, %v1230_v15 }
  0x9b   : > { %2717 = vmatmul.mubr.f32.vlgmr.msra.gmra.mrb[0].mxu0 %v3301_v17  ;;  %v3492_v17 = vpack.c.bf16 %v1230_v15, %v1227_v4 }
  0x9c   : > { %2719 = vmatprep.mubr.f32.mxu0 %v3303_v18  ;;  %v1415_v18 = vsub.f32 %v206_v2, %v1227_v4  ;;  %v1423_v27 = vand.u32 4294901760, %v1422_v25 }
  0x9d   : > { %2867 = vmatprep.subr.bf16.mxu1 %v3492_v17 }
  0x9e   : > { %2869 = vmatpush3.bf16.msra.mxu1 %v3492_v17  ;;  %v1416_v26 = vand.u32 4294901760, %v1415_v18  ;;  %v3499_v34 = vpack.c.bf16 %v1422_v25, %v1415_v18 }
  0x9f   : > { %2720 = vmatmul.mubr.f32.gmra.mrb[2].mxu0 %v3320_v28 }
  0xa0   : > { %2722 = vmatprep.mubr.f32.mxu0 %v3322_v29  ;;  %v1417_v28 = vsub.f32 %v1415_v18, %v1416_v26  ;;  %v1424_v29 = vsub.f32 %v1422_v25, %v1423_v27  ;;  %v3501_v35 = vpack.c.bf16 %v1423_v27, %v1416_v26 }
  0xa3   : > { %2723 = vmatmul.mubr.f32.gmra.mrb[4].mxu0 %v3324_v30  ;;  %v1418_v30 = vand.u32 4294901760, %v1417_v28 }
  0xa4   : > { %2725 = vmatprep.mubr.f32.mxu0 %v3326_v31  ;;  %v1425_v31 = vand.u32 4294901760, %v1424_v29 }
  0xa6   : > { %v3496_v33 = vpack.c.bf16 %v1425_v31, %v1418_v30 }
  0xa7   : > { %2726 = vmatmul.mubr.f32.gmra.mrb[6].mxu0 %v3344_v40 }
  0xa8   : > { %2728 = vmatprep.mubr.f32.mxu0 %v3382_v5  ;;  %2871 = vmatprep.subr.bf16.mxu1 %v3496_v33 }
  0xab   : > { %2729 = vmatmul.mubr.f32.gmra.mrb[8].mxu0 %v3384_v6 }
  0xac   : > { %2731 = vmatprep.mubr.f32.mxu0 %v3386_v7 }
  0xaf   : > { %2732 = vmatmul.mubr.f32.gmra.mrb[10].mxu0 %v3389_v9 }
 0x16e   : > { %v2718_v37 = vpop.f32.mrb[0].mxu0 }
 0x16f   : > { %v2890_v38 = vadd.f32 %v2718_v37, %v3506_v36  ;;  %v1103_v39 = vpop.f32.mrb[1].mxu0 }
 0x170   : > { %v2891_v40 = vadd.f32 %v3506_v36, %v1103_v39 }
 0x171   : > { %v1174_v44 = vmax.f32 %v2890_v38, 0.0 }
 0x172   : > { %v1173_v45 = vmax.f32 %v2891_v40, 0.0  ;;  %v2721_v46 = vpop.f32.mrb[2].mxu0 }
 0x173   : > { %v1194_v47 = vsel %vm1189_vm2, %v1174_v44, 0  ;;  %v2892_v48 = vadd.f32 %v2721_v46, %v3506_v36  ;;  %v1115_v53 = vpop.f32.mrb[3].mxu0 }
 0x174   : > { %v3512_v54 = vand.u32 4294901760, %v1194_v47  ;;  %v1191_v55 = vsel %vm1189_vm2, %v1173_v45, 0  ;;  %v2893_v56 = vadd.f32 %v3506_v36, %v1115_v53 }
 0x175   : > { %v3516_v57 = vand.u32 4294901760, %v1191_v55  ;;  %v1176_v58 = vmax.f32 %v2892_v48, 0.0 }
 0x176   : > { %v3519_v59 = vsub.f32 %v1194_v47, %v3512_v54  ;;  %v1175_v60 = vmax.f32 %v2893_v56, 0.0  ;;  %v2724_v61 = vpop.f32.mrb[4].mxu0 }
 0x177   : > { %v3522_v62 = vsub.f32 %v1191_v55, %v3516_v57  ;;  %v1200_v63 = vsel %vm1189_vm2, %v1176_v58, 0  ;;  %v2894_v0 = vadd.f32 %v2724_v61, %v3506_v36  ;;  %v1127_v1 = vpop.f32.mrb[5].mxu0 }
 0x178   : > { %v3526_v5 = vand.u32 4294901760, %v1200_v63  ;;  %v1197_v6 = vsel %vm1189_vm2, %v1175_v60, 0  ;;  %v2895_v7 = vadd.f32 %v3506_v36, %v1127_v1  ;;  %v1305_v8 = vand.u32 4294901760, %v3519_v59 }
 0x179   : > { %v3531_v9 = vand.u32 4294901760, %v1197_v6  ;;  %v1178_v10 = vmax.f32 %v2894_v0, 0.0  ;;  %v1295_v11 = vand.u32 4294901760, %v3522_v62 }
 0x17a   : > { %v3535_v12 = vsub.f32 %v1200_v63, %v3526_v5  ;;  %v1177_v13 = vmax.f32 %v2895_v7, 0.0  ;;  %v2727_v14 = vpop.f32.mrb[6].mxu0  ;;  %v1306_v16 = vsub.f32 %v3519_v59, %v1305_v8 }
 0x17b   : > { %v3541_v19 = vsub.f32 %v1197_v6, %v3531_v9  ;;  %v1206_v20 = vsel %vm1189_vm2, %v1178_v10, 0  ;;  %v2896_v21 = vadd.f32 %v2727_v14, %v3506_v36  ;;  %v1139_v22 = vpop.f32.mrb[7].mxu0  ;;  %v1296_v23 = vsub.f32 %v3522_v62, %v1295_v11 }
 0x17c   : > { %v3548_v24 = vand.u32 4294901760, %v1206_v20  ;;  %v1203_v32 = vsel %vm1189_vm2, %v1177_v13, 0  ;;  %v2897_v41 = vadd.f32 %v3506_v36, %v1139_v22  ;;  %v1307_v3 = vand.u32 4294901760, %v1306_v16 }
 0x17d   : > { %v3552_v42 = vand.u32 4294901760, %v1203_v32  ;;  %v1180_v43 = vmax.f32 %v2896_v21, 0.0  ;;  %v1297_v49 = vand.u32 4294901760, %v1296_v23  ;;  %v1315_v50 = vand.u32 4294901760, %v3541_v19 }
 0x17e   : > { %v3556_v51 = vsub.f32 %v1206_v20, %v3548_v24  ;;  %v1179_v52 = vmax.f32 %v2897_v41, 0.0  ;;  %v2730_v2 = vpop.f32.mrb[8].mxu0  ;;  %v1325_v4 = vand.u32 4294901760, %v3535_v12 }
 0x17f   : > { %v3560_v15 = vsub.f32 %v1203_v32, %v3552_v42  ;;  %v1212_v18 = vsel %vm1189_vm2, %v1180_v43, 0  ;;  %v2898_v25 = vadd.f32 %v2730_v2, %v3506_v36  ;;  %v1151_v26 = vpop.f32.mrb[9].mxu0  ;;  %2738 = vmatprep.mubr.f32.mxu1 %v1297_v49  ;;  %v1316_v27 = vsub.f32 %v3541_v19, %v1315_v50 }
 0x180   : > { %v3567_v28 = vand.u32 4294901760, %v1212_v18  ;;  %v1209_v29 = vsel %vm1189_vm2, %v1179_v52, 0  ;;  %v2899_v30 = vadd.f32 %v3506_v36, %v1151_v26  ;;  %2739 = vmatmul.mubr.f32.vlgmr.msra.gmra.mrb[0].mxu1 %v1307_v3  ;;  %v1326_v31 = vsub.f32 %v3535_v12, %v1325_v4 }
 0x181   : > { %v3574_v37 = vand.u32 4294901760, %v1209_v29  ;;  %v1182_v38 = vmax.f32 %v2898_v25, 0.0  ;;  %2873 = vmatpush3.bf16.msra.mxu1 %v3496_v33  ;;  %v1317_v39 = vand.u32 4294901760, %v1316_v27  ;;  %v1335_v40 = vand.u32 4294901760, %v3560_v15 }
 0x182   : > { %v3579_v44 = vsub.f32 %v1212_v18, %v3567_v28  ;;  %v1181_v45 = vmax.f32 %v2899_v30, 0.0  ;;  %v2733_v46 = vpop.f32.mrb[10].mxu0  ;;  %v1327_v47 = vand.u32 4294901760, %v1326_v31  ;;  %v1345_v48 = vand.u32 4294901760, %v3556_v51  ;;  %2875 = vmatprep.subr.bf16.mxu1 %v3499_v34 }
 0x183   : > { %v3584_v53 = vsub.f32 %v1209_v29, %v3574_v37  ;;  %v1218_v55 = vsel %vm1189_vm2, %v1182_v38, 0  ;;  %v2900_v33 = vadd.f32 %v2733_v46, %v3506_v36  ;;  %v1163_v56 = vpop.f32.mrb[11].mxu0  ;;  %2741 = vmatprep.mubr.f32.mxu1 %v1317_v39  ;;  %v1336_v58 = vsub.f32 %v3560_v15, %v1335_v40 }
 0x184   : > { %v3591_v60 = vand.u32 4294901760, %v1218_v55  ;;  %v1215_v61 = vsel %vm1189_vm2, %v1181_v45, 0  ;;  %v2901_v63 = vadd.f32 %v3506_v36, %v1163_v56  ;;  %2742 = vmatmul.mubr.f32.gmra.mrb[2].mxu1 %v1327_v47  ;;  %v1346_v0 = vsub.f32 %v3556_v51, %v1345_v48 }
 0x185   : > { %v3598_v1 = vand.u32 4294901760, %v1215_v61  ;;  %v1184_v6 = vmax.f32 %v2900_v33, 0.0  ;;  %v1337_v7 = vand.u32 4294901760, %v1336_v58  ;;  %v1355_v10 = vand.u32 4294901760, %v3584_v53 }
 0x186   : > { %v3602_v13 = vsub.f32 %v1218_v55, %v3591_v60  ;;  %v1183_v14 = vmax.f32 %v2901_v63, 0.0  ;;  %v1347_v16 = vand.u32 4294901760, %v1346_v0  ;;  %v1365_v20 = vand.u32 4294901760, %v3579_v44 }
 0x187   : > { %v3606_v36 = vsub.f32 %v1215_v61, %v3598_v1  ;;  %v1224_v21 = vsel %vm1189_vm2, %v1184_v6, 0  ;;  %2744 = vmatprep.mubr.f32.mxu1 %v1337_v7  ;;  %v1356_v22 = vsub.f32 %v3584_v53, %v1355_v10 }
 0x188   : > { %v3612_v23 = vand.u32 4294901760, %v1224_v21  ;;  %v1221_v32 = vsel %vm1189_vm2, %v1183_v14, 0  ;;  %2745 = vmatmul.mubr.f32.gmra.mrb[4].mxu1 %v1347_v16  ;;  %v1366_v41 = vsub.f32 %v3579_v44, %v1365_v20  ;;  %v1385_v43 = vand.u32 4294901760, %v3602_v13 }
 0x189   : > { %v3619_v49 = vand.u32 4294901760, %v1221_v32  ;;  %v1357_v52 = vand.u32 4294901760, %v1356_v22  ;;  %v1375_v2 = vand.u32 4294901760, %v3606_v36 }
 0x18a   : > { %v1404_v3 = vsub.f32 %v1224_v21, %v3612_v23  ;;  %v1367_v18 = vand.u32 4294901760, %v1366_v41  ;;  %v1386_v25 = vsub.f32 %v3602_v13, %v1385_v43 }
 0x18b   : > { %v1394_v26 = vsub.f32 %v1221_v32, %v3619_v49  ;;  %2747 = vmatprep.mubr.f32.mxu1 %v1357_v52  ;;  %v1376_v27 = vsub.f32 %v3606_v36, %v1375_v2 }
 0x18c   : > { %2748 = vmatmul.mubr.f32.gmra.mrb[6].mxu1 %v1367_v18  ;;  %v1405_v29 = vand.u32 4294901760, %v1404_v3  ;;  %v1387_v38 = vand.u32 4294901760, %v1386_v25 }
 0x18d   : > { %v1377_v30 = vand.u32 4294901760, %v1376_v27  ;;  %v1395_v31 = vand.u32 4294901760, %v1394_v26 }
 0x18e   : > { %v1406_v39 = vsub.f32 %v1404_v3, %v1405_v29 }
 0x18f   : > { %2750 = vmatprep.mubr.f32.mxu1 %v1377_v30  ;;  %v1396_v45 = vsub.f32 %v1394_v26, %v1395_v31 }
 0x190   : > { %2751 = vmatmul.mubr.f32.gmra.mrb[8].mxu1 %v1387_v38  ;;  %v1407_v47 = vand.u32 4294901760, %v1406_v39 }
 0x191   : > { %v1397_v46 = vand.u32 4294901760, %v1396_v45 }
 0x193   : > { %2753 = vmatprep.mubr.f32.mxu1 %v1397_v46 }
 0x194   : > { %2754 = vmatmul.mubr.f32.gmra.mrb[10].mxu1 %v1407_v47 }
 0x195   : > { %2760 = vmatprep.mubr.f32.mxu1 %v3516_v57 }
 0x198   : > { %2761 = vmatmul.mubr.f32.vlgmr.msra.gmra.mrb[0].mxu1 %v3512_v54 }
 0x199   : > { %2877 = vmatpush3.bf16.msra.mxu1 %v3499_v34  ;;  %2763 = vmatprep.mubr.f32.mxu1 %v3531_v9 }
 0x19a   : > { %2879 = vmatprep.subr.bf16.mxu1 %v3492_v17 }
 0x19c   : > { %2764 = vmatmul.mubr.f32.gmra.mrb[2].mxu1 %v3526_v5 }
 0x19d   : > { %2766 = vmatprep.mubr.f32.mxu1 %v3552_v42 }
 0x1a0   : > { %2767 = vmatmul.mubr.f32.gmra.mrb[4].mxu1 %v3548_v24 }
 0x1a1   : > { %2769 = vmatprep.mubr.f32.mxu1 %v3574_v37 }
 0x1a4   : > { %2770 = vmatmul.mubr.f32.gmra.mrb[6].mxu1 %v3567_v28 }
 0x1a5   : > { %2772 = vmatprep.mubr.f32.mxu1 %v3598_v1 }
 0x1a8   : > { %2773 = vmatmul.mubr.f32.gmra.mrb[8].mxu1 %v3591_v60 }
 0x1a9   : > { %2775 = vmatprep.mubr.f32.mxu1 %v3619_v49 }
 0x1ac   : > { %2776 = vmatmul.mubr.f32.gmra.mrb[10].mxu1 %v3612_v23 }
 0x1ad   : > { %2782 = vmatprep.mubr.f32.mxu1 %v3522_v62 }
 0x1b0   : > { %2783 = vmatmul.mubr.f32.vlgmr.msra.gmra.mrb[0].mxu1 %v3519_v59 }
 0x1b1   : > { %2881 = vmatpush3.bf16.msra.mxu1 %v3492_v17  ;;  %2785 = vmatprep.mubr.f32.mxu1 %v3541_v19 }
 0x1b2   : > { %2883 = vmatprep.subr.bf16.mxu1 %v3501_v35 }
 0x1b4   : > { %2786 = vmatmul.mubr.f32.gmra.mrb[2].mxu1 %v3535_v12 }
 0x1b5   : > { %2788 = vmatprep.mubr.f32.mxu1 %v3560_v15 }
 0x1b8   : > { %2789 = vmatmul.mubr.f32.gmra.mrb[4].mxu1 %v3556_v51 }
 0x1b9   : > { %2791 = vmatprep.mubr.f32.mxu1 %v3584_v53 }
 0x1bc   : > { %2792 = vmatmul.mubr.f32.gmra.mrb[6].mxu1 %v3579_v44 }
 0x1bd   : > { %2794 = vmatprep.mubr.f32.mxu1 %v3606_v36 }
 0x1c0   : > { %2795 = vmatmul.mubr.f32.gmra.mrb[8].mxu1 %v3602_v13 }
 0x1c1   : > { %2797 = vmatprep.mubr.f32.mxu1 %v1394_v26 }
 0x1c4   : > { %2798 = vmatmul.mubr.f32.gmra.mrb[10].mxu1 %v1404_v3 }
 0x1c5   : > { %2804 = vmatprep.mubr.f32.mxu1 %v1295_v11 }
 0x1c8   : > { %2805 = vmatmul.mubr.f32.vlgmr.msra.gmra.mrb[0].mxu1 %v1305_v8 }
 0x1c9   : > { %2885 = vmatpush3.bf16.msra.mxu1 %v3501_v35  ;;  %2807 = vmatprep.mubr.f32.mxu1 %v1315_v50 }
 0x1ca   : > { %2887 = vmatprep.subr.bf16.mxu1 %v3492_v17 }
 0x1cc   : > { %2808 = vmatmul.mubr.f32.gmra.mrb[2].mxu1 %v1325_v4 }
 0x1cd   : > { %2810 = vmatprep.mubr.f32.mxu1 %v1335_v40 }
 0x1d0   : > { %2811 = vmatmul.mubr.f32.gmra.mrb[4].mxu1 %v1345_v48 }
 0x1d1   : > { %2813 = vmatprep.mubr.f32.mxu1 %v1355_v10 }
 0x1d4   : > { %2814 = vmatmul.mubr.f32.gmra.mrb[6].mxu1 %v1365_v20 }
 0x1d5   : > { %2816 = vmatprep.mubr.f32.mxu1 %v1375_v2 }
 0x1d8   : > { %2817 = vmatmul.mubr.f32.gmra.mrb[8].mxu1 %v1385_v43 }
 0x1d9   : > { %2819 = vmatprep.mubr.f32.mxu1 %v1395_v31 }
 0x1dc   : > { %2820 = vmatmul.mubr.f32.gmra.mrb[10].mxu1 %v1405_v29 }
 0x1dd   : > { %2826 = vmatprep.mubr.f32.mxu1 %v3516_v57 }
 0x1e0   : > { %2827 = vmatmul.mubr.f32.vlgmr.msra.gmra.mrb[0].mxu1 %v3512_v54 }
 0x1e1   : > { %2889 = vmatpush3.bf16.msra.mxu1 %v3492_v17  ;;  %2829 = vmatprep.mubr.f32.mxu1 %v3531_v9  ;;  %v2438_v17 = vld [vmem:[%s3786_s2 + $0x10] ss:$0 sm:$0xff] }
 0x1e4   : > { %2830 = vmatmul.mubr.f32.gmra.mrb[2].mxu1 %v3526_v5 }
 0x1e5   : > { %2832 = vmatprep.mubr.f32.mxu1 %v3552_v42 }
 0x1e8   : > { %2833 = vmatmul.mubr.f32.gmra.mrb[4].mxu1 %v3548_v24 }
 0x1e9   : > { %2835 = vmatprep.mubr.f32.mxu1 %v3574_v37 }
 0x1ec   : > { %2836 = vmatmul.mubr.f32.gmra.mrb[6].mxu1 %v3567_v28 }
 0x1ed   : > { %2838 = vmatprep.mubr.f32.mxu1 %v3598_v1 }
 0x1f0   : > { %2839 = vmatmul.mubr.f32.gmra.mrb[8].mxu1 %v3591_v60 }
 0x1f1   : > { %2841 = vmatprep.mubr.f32.mxu1 %v3619_v49 }
 0x1f4   : > { %2842 = vmatmul.mubr.f32.gmra.mrb[10].mxu1 %v3612_v23 }
 0x1f5   : > { %2848 = vmatprep.mubr.f32.mxu1 %v3516_v57 }
 0x1f8   : > { %2849 = vmatmul.mubr.f32.vlgmr.msra.gmra.mrb[0].mxu1 %v3512_v54 }
 0x1f9   : > { %2851 = vmatprep.mubr.f32.mxu1 %v3531_v9 }
 0x1fc   : > { %2852 = vmatmul.mubr.f32.gmra.mrb[2].mxu1 %v3526_v5 }
 0x1fd   : > { %2854 = vmatprep.mubr.f32.mxu1 %v3552_v42 }
 0x200   : > { %2855 = vmatmul.mubr.f32.gmra.mrb[4].mxu1 %v3548_v24 }
 0x201   : > { %2857 = vmatprep.mubr.f32.mxu1 %v3574_v37 }
 0x204   : > { %2858 = vmatmul.mubr.f32.gmra.mrb[6].mxu1 %v3567_v28 }
 0x205   : > { %2860 = vmatprep.mubr.f32.mxu1 %v3598_v1 }
 0x208   : > { %2861 = vmatmul.mubr.f32.gmra.mrb[8].mxu1 %v3591_v60 }
 0x209   : > { %2863 = vmatprep.mubr.f32.mxu1 %v3619_v49 }
 0x20c   : > { %2864 = vmatmul.mubr.f32.gmra.mrb[10].mxu1 %v3612_v23 }
 0x2cb   : > { %v2850_v34 = vpop.f32.mrb[0].mxu1 }
 0x2cc   : > { %v2902_v35 = vadd.f32 %v2850_v34, %v2438_v17  ;;  %v2088_v54 = vpop.f32.mrb[1].mxu1 }
 0x2cd   : > { %v2903_v57 = vadd.f32 %v2438_v17, %v2088_v54 }
 0x2ce   : > { %2160 = vst.msk [vmem:[%s3699_s14 + $0x8] sm:$0xff] %vm2158_vm3, %v2902_v35 }
 0x2cf   : > { %2159 = vst.msk [vmem:[%s3699_s14] sm:$0xff] %vm2158_vm3, %v2903_v57  ;;  %v2853_v59 = vpop.f32.mrb[2].mxu1 }
 0x2d0   : > { %v2904_v62 = vadd.f32 %v2853_v59, %v2438_v17  ;;  %v2100_v5 = vpop.f32.mrb[3].mxu1 }
 0x2d1   : > { %v2905_v8 = vadd.f32 %v2438_v17, %v2100_v5 }
 0x2d2   : > { %2162 = vst.msk [vmem:[%s3699_s14 + $0x18] sm:$0xff] %vm2158_vm3, %v2904_v62 }
 0x2d3   : > { %2161 = vst.msk [vmem:[%s3699_s14 + $0x10] sm:$0xff] %vm2158_vm3, %v2905_v8  ;;  %v2856_v9 = vpop.f32.mrb[4].mxu1 }
 0x2d4   : > { %v2906_v11 = vadd.f32 %v2856_v9, %v2438_v17  ;;  %v2112_v12 = vpop.f32.mrb[5].mxu1 }
 0x2d5   : > { %v2907_v19 = vadd.f32 %v2438_v17, %v2112_v12 }
 0x2d6   : > { %2164 = vst.msk [vmem:[%s3699_s14 + $0x28] sm:$0xff] %vm2158_vm3, %v2906_v11 }
 0x2d7   : > { %2163 = vst.msk [vmem:[%s3699_s14 + $0x20] sm:$0xff] %vm2158_vm3, %v2907_v19  ;;  %v2859_v24 = vpop.f32.mrb[6].mxu1 }
 0x2d8   : > { %v2908_v42 = vadd.f32 %v2859_v24, %v2438_v17  ;;  %v2124_v50 = vpop.f32.mrb[7].mxu1 }
 0x2d9   : > { %v2909_v51 = vadd.f32 %v2438_v17, %v2124_v50 }
 0x2da   : > { %2166 = vst.msk [vmem:[%s3699_s14 + $0x38] sm:$0xff] %vm2158_vm3, %v2908_v42 }
 0x2db   : > { %2165 = vst.msk [vmem:[%s3699_s14 + $0x30] sm:$0xff] %vm2158_vm3, %v2909_v51  ;;  %v2862_v4 = vpop.f32.mrb[8].mxu1 }
 0x2dc   : > { %v2910_v15 = vadd.f32 %v2862_v4, %v2438_v17  ;;  %v2136_v28 = vpop.f32.mrb[9].mxu1 }
 0x2dd   : > { %v2911_v37 = vadd.f32 %v2438_v17, %v2136_v28  ;;  %2177 = sbr.rel (!%p3261_p4) target bundleno = 801 (0x321), region = 36 }
 0x2de   : > { %2168 = vst.msk [vmem:[%s3699_s14 + $0x48] sm:$0xff] %vm2158_vm3, %v2910_v15 }
 0x2df   : > { %2167 = vst.msk [vmem:[%s3699_s14 + $0x40] sm:$0xff] %vm2158_vm3, %v2911_v37  ;;  %v2865_v40 = vpop.f32.mrb[10].mxu1 }
 0x2e0   : > { %v2912_v44 = vadd.f32 %v2865_v40, %v2438_v17  ;;  %v2148_v48 = vpop.f32.mrb[11].mxu1 }
 0x2e1   : > { %v2913_v53 = vadd.f32 %v2438_v17, %v2148_v48 }
 0x2e2   : > { %2170 = vst.msk [vmem:[%s3699_s14 + $0x58] sm:$0xff] %vm2158_vm3, %v2912_v44 }
 0x2e3   : > { %2169 = vst.msk [vmem:[%s3699_s14 + $0x50] sm:$0xff] %vm2158_vm3, %v2913_v53 }
 0x2e4   : > { %s3796_s12 = smov (!%p2180_p8, %s2179_s12), 12 }
 0x2e5   : > { %s2439_s24 = sshll.u32 %s3796_s12, 7 }
 0x2e6   : > { %p2442_p9 = scmp.eq.s32.totalorder %s2439_s24, 0 }
 0x2e7   : > { %3124 = sdivrem.u32 (!%p2442_p9), %s3796_s12, 12 }
 0x2e8   : > { %2188 = sbr.rel (%p2442_p9) target bundleno = 801 (0x321), region = 40 }
 0x2f0   : > { %s3738_s20 = spop.drf %3124 }
 0x2f1   : > { %p2443_p10 = scmp.le.s32.totalorder %s3738_s20, 0 }
 0x2f2   : > { %s3789_s15 = smov (!%p2443_p10), %s3732_s22  ;;  %s3790_s23 = smov (!%p2443_p10), %s3699_s14 }
 0x2f3   : > { %2388 = sbr.rel (%p2443_p10) target bundleno = 772 (0x304), region = 116  ;;  %s3747_s25 = smov (!%p2443_p10), 0  }
 0x2f4   : > { %s3749_s26 = smov (!%p2443_p10), 0  }
 0x2fa LB: >> { %v2274_v55 = vld [vmem:[%s3190_s23] sm:$0xff]  ;;  %v2276_v33 = vld [vmem:[%s3190_s23 + $0x8] sm:$0xff]  ;;  %v2278_v56 = vld [vmem:[%s3190_s23 + $0x10] sm:$0xff]  ;;  %s2298_s27 = sadd.s32 1, %s3194_s25  ;;  %s2268_s26 = sadd.s32 1, %s3198_s26   ;;  %s3198_s26 = sphi %s3749_s26, %s2268_s26   ;;  %s3194_s25 = sphi %s3747_s25, %s3791_s25   ;;  %s3190_s23 = sphi %s3790_s23, %s2303_s23   ;;  %s3186_s15 = sphi %s3789_s15, %s2304_s15  }
 0x2fb   : >> { %2275 = vst [vmem:[%s3186_s15] sm:$0xff] %v2274_v55  ;;  %2277 = vst [vmem:[%s3186_s15 + $0x8] sm:$0xff] %v2276_v33  ;;  %v2280_v58 = vld [vmem:[%s3190_s23 + $0x18] sm:$0xff]  ;;  %v2282_v60 = vld [vmem:[%s3190_s23 + $0x20] sm:$0xff]  ;;  %p2299_p11 = scmp.ge.s32.totalorder %s2298_s27, %s3738_s20  ;;  %p2267_p12 = scmp.ge.s32.totalorder %s2268_s26, %s3738_s20 }
 0x2fc   : >> { %2279 = vst [vmem:[%s3186_s15 + $0x10] sm:$0xff] %v2278_v56  ;;  %v2284_v61 = vld [vmem:[%s3190_s23 + $0x28] sm:$0xff]  ;;  %2281 = vst [vmem:[%s3186_s15 + $0x18] sm:$0xff] %v2280_v58  ;;  %v2286_v63 = vld [vmem:[%s3190_s23 + $0x30] sm:$0xff] }
 0x2fd   : >> { %2283 = vst [vmem:[%s3186_s15 + $0x20] sm:$0xff] %v2282_v60  ;;  %2285 = vst [vmem:[%s3186_s15 + $0x28] sm:$0xff] %v2284_v61  ;;  %v2288_v0 = vld [vmem:[%s3190_s23 + $0x38] sm:$0xff]  ;;  %v2290_v1 = vld [vmem:[%s3190_s23 + $0x40] sm:$0xff]  ;;  %s3798_s27 = smov (%p2299_p11, %s2298_s27), 0  ;;  %2270 = sbr.rel (!%p2267_p12) target bundleno = 762 (0x2fa), region = 122 }
 0x2fe   : >> { %2287 = vst [vmem:[%s3186_s15 + $0x30] sm:$0xff] %v2286_v63  ;;  %2289 = vst [vmem:[%s3186_s15 + $0x38] sm:$0xff] %v2288_v0  ;;  %v2292_v6 = vld [vmem:[%s3190_s23 + $0x48] sm:$0xff]  ;;  %v2294_v7 = vld [vmem:[%s3190_s23 + $0x50] sm:$0xff]  ;;  %s2301_s28 = smul.u32 96, %s3798_s27  ;;  %s3791_s25 = smov %s3798_s27 }
 0x2ff   : >> { %2291 = vst [vmem:[%s3186_s15 + $0x40] sm:$0xff] %v2290_v1  ;;  %v2296_v10 = vld [vmem:[%s3190_s23 + $0x58] sm:$0xff]  ;;  %2293 = vst [vmem:[%s3186_s15 + $0x48] sm:$0xff] %v2292_v6 }
 0x300   : >> { %2295 = vst [vmem:[%s3186_s15 + $0x50] sm:$0xff] %v2294_v7  ;;  %2297 = vst [vmem:[%s3186_s15 + $0x58] sm:$0xff] %v2296_v10  ;;  %s2303_s23 = scalar_lea.vmem %s3699_s14, %s2301_s28 [#allocation2]   ;;  %s2304_s15 = scalar_lea.vmem %s3732_s22, %s2301_s28  }
 0x304 PF: > { %3126 = sdivrem.u32 %s3796_s12, 12 }
 0x305   : > { %s2444_s29 = smul.u32 96, %s3738_s20 }
 0x307   : > { %s2309_s30 = scalar_lea.vmem %s3699_s14, %s2444_s29 [#allocation2]   ;;  %s2311_s4 = scalar_lea.vmem %s3732_s22, %s2444_s29  }
 0x30d   : > { %s3127_s5 = spop.drf %3126 }
 0x30e   : > { %p2446_p13 = scmp.le.s32.totalorder %s3127_s5, 0 }
 0x30f   : > { %s3200_s6 = smov (!%p2446_p13), %s2311_s4   ;;  %s3204_s7 = smov (!%p2446_p13), %s2309_s30  }
 0x310   : > { %2402 = sbr.rel (%p2446_p13) target bundleno = 801 (0x321), region = 127  ;;  %s3208_s8 = smov (!%p2446_p13), 0  }
 0x311   : > { %s3212_s9 = smov (!%p2446_p13), 0  }
 0x317 LB: >> { %v2321_v13 = vld [vmem:[%s3206_s7] sm:$0xff]  ;;  %s2323_s10 = sadd.s32 1, %s3210_s8  ;;  %s2315_s9 = sadd.s32 1, %s3214_s9   ;;  %s3214_s9 = sphi %s3212_s9, %s2315_s9   ;;  %s3210_s8 = sphi %s3208_s8, %s3209_s8   ;;  %s3206_s7 = sphi %s3204_s7, %s2328_s7   ;;  %s3202_s6 = sphi %s3200_s6, %s2329_s6  }
 0x318   : >> { %2322 = vst [vmem:[%s3202_s6] sm:$0xff] %v2321_v13  ;;  %p2324_p0 = scmp.ge.s32.totalorder %s2323_s10, %s3127_s5  ;;  %p2314_p1 = scmp.ge.s32.totalorder %s2315_s9, %s3127_s5 }
 0x31a   : >> { %s3800_s10 = smov (%p2324_p0, %s2323_s10), 0  ;;  %2317 = sbr.rel (!%p2314_p1) target bundleno = 791 (0x317), region = 133 }
 0x31b   : >> { %s2447_s11 = sshll.u32 %s3800_s10, 3  ;;  %s3209_s8 = smov %s3800_s10  }
 0x31c   : >> { %s2328_s7 = scalar_lea.vmem %s2309_s30, %s2447_s11 [#allocation2]   ;;  %s2329_s6 = scalar_lea.vmem %s2311_s4, %s2447_s11  }
 0x321 PF: > { %p10_p2 = scmp.ge.s32.totalorder %s3251_s16, 4   ;;  %s3792_s12 = smov %s3178_s13 }
 0x322   : > { %s3793_s13 = smov %s3259_s19  ;;  %s3794_s14 = smov %s3251_s16 }
 0x323   :  { %12 = sbr.rel (!%p10_p2) target bundleno = 2 (0x2), region = 144 }

</bundles_post_ra>
